<compile_context>
chip_gen: v5e
topology: v5e:2x2
jax: 0.10.0
libtpu: 0.0.40
codegen_flags: <defaults>
</compile_context>

<pallas_src>
import jax
import jax.numpy as jnp
from jax.experimental import pallas as pl
from jax.experimental.pallas import tpu as pltpu


def _round_up(n, m):
    return ((n + m - 1) // m) * m


def _pick_hidden_tile(f_padded, want):
    """Largest multiple of 128 <= `want` that evenly divides f_padded (a 128-multiple)."""
    t = max(128, (min(want, f_padded) // 128) * 128)
    while f_padded % t:
        t -= 128
    return t


_HW_CACHE = None


def _hw():
    """Generation-aware hardware config (cached; trace-time Python only)."""
    global _HW_CACHE
    if _HW_CACHE is not None:
        return _HW_CACHE
    kind = jax.devices()[0].device_kind.lower()
    is_v7 = ("v7" in kind) or ("tpu7" in kind) or ("7x" in kind)
    is_v6 = "v6" in kind
    try:
        vmem_cap = int(pltpu.get_tpu_info().vmem_capacity_bytes)
    except Exception:
        vmem_cap = (64 << 20) if is_v7 else (128 << 20)
    _HW_CACHE = dict(
        kind=kind,
        vmem_cap=vmem_cap,
        lane_align=256 if (is_v6 or is_v7) else 128,   # 2x256x256 MXU on v6e/v7x
        tm_pref=512 if (is_v6 or is_v7) else 256,       # weight re-streaming roofline
        two_cores=is_v7,                                # 2 TensorCores per chip on v7x
    )
    return _HW_CACHE


def prepare_ffn_params(w1, b1, w2, b2):
    """Pad + bf16-cast the static FFN parameters ONCE (outside the per-call path).

    w1: [E, d_ff]  (transposed nn.Linear(embed_dim, d_ff).weight)
    b1: [d_ff]
    w2: [d_ff, E]  (transposed nn.Linear(d_ff, embed_dim).weight)
    b2: [E]
    """
    hw = _hw()
    E, d_ff = w1.shape
    lane = hw["lane_align"]
    Ep = _round_up(E, lane)
    Fp = _round_up(d_ff, lane)
    return dict(
        E=E, d_ff=d_ff, Ep=Ep, Fp=Fp,
        w1=jnp.pad(w1, ((0, Ep - E), (0, Fp - d_ff))).astype(jnp.bfloat16),
        b1=jnp.pad(b1, (0, Fp - d_ff)).astype(jnp.float32).reshape(1, Fp),
        w2=jnp.pad(w2, ((0, Fp - d_ff), (0, Ep - E))).astype(jnp.bfloat16),
        b2=jnp.pad(b2, (0, Ep - E)).astype(jnp.float32).reshape(1, Ep),
    )


# ----------------------------------------------------------------------------- kernels


def ffn_kernel_resident(x_ref, w1_ref, b1_ref, w2_ref, b2_ref, o_ref):
    """Weights fully VMEM-resident: single pass, no hidden-dim accumulation."""
    x_f32 = x_ref[...].astype(jnp.float32)                      # exact f32 residual
    h = jnp.dot(x_f32.astype(jnp.bfloat16), w1_ref[...],
                preferred_element_type=jnp.float32)
    h = jnp.maximum(h + b1_ref[...], 0.0)
    # TODO(synk): dropout is identity here (inference/eval mode); training-mode
    # stochastic masking would use pltpu.prng_seed + pltpu.prng_random_bits.
    y = jnp.dot(h.astype(jnp.bfloat16), w2_ref[...],
                preferred_element_type=jnp.float32)
    o_ref[...] = (y + b2_ref[...] + x_f32).astype(o_ref.dtype)


def ffn_kernel_tiled(x_ref, w1_ref, b1_ref, w2_ref, b2_ref, o_ref, xb_ref, acc_ref):
    """Hidden (d_ff) dim tiled across the last grid axis; f32 accumulator."""
    j = pl.program_id(1)

    @pl.when(j == 0)
    def _():
        # Cast x -> bf16 once per row tile; reused for every hidden (j) step.
        xb_ref[...] = x_ref[...].astype(jnp.bfloat16)

    h = jnp.dot(xb_ref[...], w1_ref[...], preferred_element_type=jnp.float32)
    h = jnp.maximum(h + b1_ref[...], 0.0)
    part = jnp.dot(h.astype(jnp.bfloat16), w2_ref[...],
                   preferred_element_type=jnp.float32)

    @pl.when(j == 0)
    def _():
        acc_ref[...] = part              # direct store: no zero-init + redundant load

    @pl.when(j > 0)
    def _():
        acc_ref[...] += part

    @pl.when(j == pl.num_programs(1) - 1)
    def _():
        # Single f32 x read only at finalize -> exact-precision residual.
        o_ref[...] = (acc_ref[...] + b2_ref[...]
                      + x_ref[...].astype(jnp.float32)).astype(o_ref.dtype)


# ----------------------------------------------------------------------------- wrapper


def position_wise_ffn(x, params, *, prefer_resident=True, tm_hint=None, tf_hint=None):
    """x: [B, S, E]. Returns w_2(relu(w_1(x))) + x in x.dtype.

    `params` comes from prepare_ffn_params (pre-padded, pre-cast weights).
    """
    hw = _hw()
    E, Ep, Fp = params["E"], params["Ep"], params["Fp"]
    B, S, Ex = x.shape
    assert Ex == E, f"embed dim mismatch: {Ex} vs {E}"
    M = B * S
    out_dtype = x.dtype
    xbytes = jnp.dtype(x.dtype).itemsize
    obytes = jnp.dtype(out_dtype).itemsize

    # ---- row tile (tm): generation-preferred, 128-aligned, megacore aware.
    tm = tm_hint if tm_hint is not None else hw["tm_pref"]
    tm = max(128, (min(tm, _round_up(M, 128)) // 128) * 128)
    if hw["two_cores"]:
        # Keep >= 2 row tiles so both v7x TensorCores get work, when M allows.
        while (_round_up(M, tm) // tm) < 2 and tm > 128:
            tm = max(128, ((tm // 2) // 128) * 128)

    # ---- VMEM budgets (headroom for compiler internals / unaccounted temps).
    vmem_cap = hw["vmem_cap"]
    resident_budget = int(vmem_cap * 0.75)
    tiled_budget = int(vmem_cap * 0.78)
    vmem_ceiling = int(vmem_cap * 0.82)

    def resident_need(tm_):
        return (2 * tm_ * Ep * (xbytes + obytes)      # x + out tiles (double-buffered)
                + 2 * 2 * Ep * Fp * 2                 # w1 + w2 bf16 (counted 2-buffered)
                + 2 * (8 * Fp + 8 * Ep) * 4           # sublane-padded biases
                + tm_ * Fp * (4 + 2)                  # h f32 + h bf16 cast temp
                + tm_ * Ep * 2)                       # x bf16 cast temp

    def tiled_need(tm_, tf_):
        return (2 * (tm_ * Ep * xbytes + Ep * tf_ * 2 + tf_ * Ep * 2
                     + 8 * tf_ * 4 + 8 * Ep * 4 + tm_ * Ep * obytes)
                + tm_ * Ep * 4                        # f32 accumulator scratch
                + tm_ * Ep * 2                        # bf16 x cache scratch
                + tm_ * tf_ * (4 + 2))                # h f32 + h bf16 cast temp

    use_resident = prefer_resident and resident_need(tm) <= resident_budget
    flops_per_row = 2 * 2 * Ep * Fp
    weight_bytes = 2 * Ep * Fp * 2                    # w1 + w2, bf16

    if use_resident:
        Mp = _round_up(M, tm)
        x2d = jnp.pad(x.reshape(M, E), ((0, Mp - M), (0, Ep - E)))
        vmem_need = resident_need(tm)
        cost = pl.CostEstimate(
            flops=int(Mp * flops_per_row), transcendentals=0,
            bytes_accessed=int(Mp * Ep * (xbytes + obytes) + weight_bytes
                               + Fp * 4 + Ep * 4))
        out = pl.pallas_call(
            ffn_kernel_resident,
            out_shape=jax.ShapeDtypeStruct((Mp, Ep), out_dtype),
            grid_spec=pltpu.PrefetchScalarGridSpec(
                num_scalar_prefetch=0,
                grid=(Mp // tm,),
                in_specs=[
                    pl.BlockSpec((tm, Ep), lambda i: (i, 0)),   # x rows
                    pl.BlockSpec((Ep, Fp), lambda i: (0, 0)),   # w1 (VMEM-resident)
                    pl.BlockSpec((1, Fp), lambda i: (0, 0)),    # b1
                    pl.BlockSpec((Fp, Ep), lambda i: (0, 0)),   # w2 (VMEM-resident)
                    pl.BlockSpec((1, Ep), lambda i: (0, 0)),    # b2
                ],
                out_specs=pl.BlockSpec((tm, Ep), lambda i: (i, 0)),
            ),
            compiler_params=pltpu.CompilerParams(
                dimension_semantics=("parallel",),
                vmem_limit_bytes=int(min(max(vmem_need + (4 << 20), 32 << 20),
                                         vmem_ceiling)),
            ),
            cost_estimate=cost,
        )(x2d, params["w1"], params["b1"], params["w2"], params["b2"])
    else:
        # Hidden (d_ff) tiling with f32 accumulation; shrink tf (then tm) to fit.
        tf = _pick_hidden_tile(Fp, tf_hint if tf_hint is not None else 512)
        while tiled_need(tm, tf) > tiled_budget and tf > 128:
            tf = _pick_hidden_tile(Fp, tf - 128)
        while tiled_need(tm, tf) > tiled_budget and tm > 128:
            tm -= 128
        Mp = _round_up(M, tm)
        x2d = jnp.pad(x.reshape(M, E), ((0, Mp - M), (0, Ep - E)))
        vmem_need = tiled_need(tm, tf)
        row_tiles = Mp // tm
        cost = pl.CostEstimate(
            flops=int(Mp * flops_per_row), transcendentals=0,
            bytes_accessed=int(Mp * Ep * (xbytes + obytes)
                               + row_tiles * (weight_bytes + Fp * 4 + Ep * 4)))
        # NOTE: if exposed weight DMA remains at j boundaries, the next lever is
        # pipeline_mode=pl.Buffered(3) on the w1/w2 specs (VMEM headroom permitting).
        out = pl.pallas_call(
            ffn_kernel_tiled,
            out_shape=jax.ShapeDtypeStruct((Mp, Ep), out_dtype),
            grid_spec=pltpu.PrefetchScalarGridSpec(
                num_scalar_prefetch=0,
                grid=(Mp // tm, Fp // tf),
                in_specs=[
                    pl.BlockSpec((tm, Ep), lambda i, j: (i, 0)),   # x rows (resident over j)
                    pl.BlockSpec((Ep, tf), lambda i, j: (0, j)),   # w1 hidden slice
                    pl.BlockSpec((1, tf), lambda i, j: (0, j)),    # b1 hidden slice
                    pl.BlockSpec((tf, Ep), lambda i, j: (j, 0)),   # w2 hidden slice
                    pl.BlockSpec((1, Ep), lambda i, j: (0, 0)),    # b2 (grid-invariant)
                ],
                out_specs=pl.BlockSpec((tm, Ep), lambda i, j: (i, 0)),
                scratch_shapes=[
                    pltpu.VMEM((tm, Ep), jnp.bfloat16),   # cached bf16 x tile
                    pltpu.VMEM((tm, Ep), jnp.float32),    # accumulator
                ],
            ),
            compiler_params=pltpu.CompilerParams(
                dimension_semantics=("parallel", "arbitrary"),
                vmem_limit_bytes=int(min(max(vmem_need + (4 << 20), 32 << 20),
                                         vmem_ceiling)),
            ),
            cost_estimate=cost,
        )(x2d, params["w1"], params["b1"], params["w2"], params["b2"])

    return out[:M, :E].reshape(B, S, E)


# ----------------------------------------------------------------------------- test


if __name__ == "__main__":
    # Small, deterministic shapes consistent with the module.
    batch, seq, embed_dim, d_ff = 2, 8, 32, 64

    key = jax.random.PRNGKey(0)
    kx, kw1, kb1, kw2, kb2 = jax.random.split(key, 5)

    x = jax.random.normal(kx, (batch, seq, embed_dim), dtype=jnp.float32)

    # nn.Linear(embed_dim, d_ff): weight [d_ff, E], bias [d_ff].  We store the
    # transposed weight [E, d_ff] so the kernel computes x @ w1 == x @ W1.T.
    w1 = jax.random.normal(kw1, (embed_dim, d_ff), dtype=jnp.float32) * 0.05
    b1 = jax.random.normal(kb1, (d_ff,), dtype=jnp.float32) * 0.05
    w2 = jax.random.normal(kw2, (d_ff, embed_dim), dtype=jnp.float32) * 0.05
    b2 = jax.random.normal(kb2, (embed_dim,), dtype=jnp.float32) * 0.05

    params = prepare_ffn_params(w1, b1, w2, b2)          # pad + bf16-cast ONCE
    y = jax.block_until_ready(position_wise_ffn(x, params))

    # Pure-JAX f32 reference (kernel uses bf16 matmul operands -> looser tolerance).
    x2d = x.reshape(-1, embed_dim)
    ref = (jnp.maximum(x2d @ w1 + b1, 0.0) @ w2 + b2 + x2d).reshape(x.shape)
    assert jnp.allclose(y, ref, atol=3e-2, rtol=3e-2), "mismatch vs reference"

    # Ragged / non-128-aligned shapes, forced through the hidden-dim-tiled path
    # (multiple j steps) to exercise padding + accumulation logic.
    B2, S2, E2, F2 = 2, 37, 48, 200
    k2 = jax.random.split(key, 6)
    x_r = jax.random.normal(k2[0], (B2, S2, E2), dtype=jnp.float32)
    w1_r = jax.random.normal(k2[1], (E2, F2), dtype=jnp.float32) * 0.05
    b1_r = jax.random.normal(k2[2], (F2,), dtype=jnp.float32) * 0.05
    w2_r = jax.random.normal(k2[3], (F2, E2), dtype=jnp.float32) * 0.05
    b2_r = jax.random.normal(k2[4], (E2,), dtype=jnp.float32) * 0.05

    params_r = prepare_ffn_params(w1_r, b1_r, w2_r, b2_r)
    y_r = jax.block_until_ready(
        position_wise_ffn(x_r, params_r, prefer_resident=False, tf_hint=128))
    x2d_r = x_r.reshape(-1, E2)
    ref_r = (jnp.maximum(x2d_r @ w1_r + b1_r, 0.0) @ w2_r + b2_r + x2d_r).reshape(x_r.shape)
    assert jnp.allclose(y_r, ref_r, atol=3e-2, rtol=3e-2), "ragged mismatch vs reference"

    print("KERNEL_OK")
</pallas_src>

<mosaic_0001>
module attributes {stable_mosaic.version = 11 : i64} {
  func.func @ffn_kernel_resident(%arg0: i32, %arg1: memref<128x128xf32, #tpu.memory_space<vmem>>, %arg2: memref<128x128xbf16, #tpu.memory_space<vmem>>, %arg3: memref<1x128xf32, #tpu.memory_space<vmem>>, %arg4: memref<128x128xbf16, #tpu.memory_space<vmem>>, %arg5: memref<1x128xf32, #tpu.memory_space<vmem>>, %arg6: memref<128x128xf32, #tpu.memory_space<vmem>>) attributes {dimension_semantics = [#tpu.dimension_semantics<parallel>], iteration_bounds = array<i64: 1>, scalar_prefetch = 0 : i64, scratch_operands = 0 : i64, tpu.core_type = #tpu.core_type<tc>, window_params = [{transform_indices = @transform_0, window_bounds = array<i64: 128, 128>}, {pipeline_mode = #tpu.pipeline_mode<synchronous>, transform_indices = @transform_1, window_bounds = array<i64: 128, 128>}, {pipeline_mode = #tpu.pipeline_mode<synchronous>, transform_indices = @transform_2, window_bounds = array<i64: 1, 128>}, {pipeline_mode = #tpu.pipeline_mode<synchronous>, transform_indices = @transform_3, window_bounds = array<i64: 128, 128>}, {pipeline_mode = #tpu.pipeline_mode<synchronous>, transform_indices = @transform_4, window_bounds = array<i64: 1, 128>}, {transform_indices = @transform_5, window_bounds = array<i64: 128, 128>}]} {
    %c0 = arith.constant 0 : index
    %c0_0 = arith.constant 0 : index
    %0 = vector.load %arg1[%c0, %c0_0] : memref<128x128xf32, #tpu.memory_space<vmem>>, vector<128x128xf32>
    %1 = arith.truncf %0 : vector<128x128xf32> to vector<128x128xbf16>
    %c0_1 = arith.constant 0 : index
    %c0_2 = arith.constant 0 : index
    %2 = vector.load %arg2[%c0_1, %c0_2] : memref<128x128xbf16, #tpu.memory_space<vmem>>, vector<128x128xbf16>
    %cst = arith.constant dense<0.000000e+00> : vector<128x128xf32>
    %3 = tpu.matmul %1, %2, %cst {dimension_numbers = #tpu.dot_dimension_numbers<[1], [0], [0], [1], [0, 0, 1, 1], [], []>} : vector<128x128xbf16>, vector<128x128xbf16>, vector<128x128xf32> -> vector<128x128xf32>
    %c0_3 = arith.constant 0 : index
    %c0_4 = arith.constant 0 : index
    %4 = vector.load %arg3[%c0_3, %c0_4] : memref<1x128xf32, #tpu.memory_space<vmem>>, vector<1x128xf32>
    %5 = vector.broadcast %4 : vector<1x128xf32> to vector<128x128xf32>
    %6 = arith.addf %3, %5 : vector<128x128xf32>
    %cst_5 = arith.constant 0.000000e+00 : f32
    %7 = vector.broadcast %cst_5 : f32 to vector<128x128xf32>
    %8 = arith.maximumf %6, %7 : vector<128x128xf32>
    %9 = arith.truncf %8 : vector<128x128xf32> to vector<128x128xbf16>
    %c0_6 = arith.constant 0 : index
    %c0_7 = arith.constant 0 : index
    %10 = vector.load %arg4[%c0_6, %c0_7] : memref<128x128xbf16, #tpu.memory_space<vmem>>, vector<128x128xbf16>
    %cst_8 = arith.constant dense<0.000000e+00> : vector<128x128xf32>
    %11 = tpu.matmul %9, %10, %cst_8 {dimension_numbers = #tpu.dot_dimension_numbers<[1], [0], [0], [1], [0, 0, 1, 1], [], []>} : vector<128x128xbf16>, vector<128x128xbf16>, vector<128x128xf32> -> vector<128x128xf32>
    %c0_9 = arith.constant 0 : index
    %c0_10 = arith.constant 0 : index
    %12 = vector.load %arg5[%c0_9, %c0_10] : memref<1x128xf32, #tpu.memory_space<vmem>>, vector<1x128xf32>
    %13 = vector.broadcast %12 : vector<1x128xf32> to vector<128x128xf32>
    %14 = arith.addf %11, %13 : vector<128x128xf32>
    %15 = arith.addf %14, %0 : vector<128x128xf32>
    %c0_11 = arith.constant 0 : index
    %c0_12 = arith.constant 0 : index
    %16 = vector.load %arg6[%c0_11, %c0_12] : memref<128x128xf32, #tpu.memory_space<vmem>>, vector<128x128xf32>
    tpu.vector_store %arg6[%c0_11, %c0_12], %15 {strides = array<i32>} : memref<128x128xf32, #tpu.memory_space<vmem>>, vector<128x128xf32>,
    return
  }
  func.func @transform_0(%arg0: i32) -> (i32, i32) {
    %c0_i32 = arith.constant 0 : i32
    %c0_i32_0 = arith.constant 0 : i32
    return %arg0, %c0_i32 : i32, i32
  }
  func.func @transform_1(%arg0: i32) -> (i32, i32) {
    %c0_i32 = arith.constant 0 : i32
    %c0_i32_0 = arith.constant 0 : i32
    %c0_i32_1 = arith.constant 0 : i32
    return %c0_i32, %c0_i32_0 : i32, i32
  }
  func.func @transform_2(%arg0: i32) -> (i32, i32) {
    %c0_i32 = arith.constant 0 : i32
    %c0_i32_0 = arith.constant 0 : i32
    %c0_i32_1 = arith.constant 0 : i32
    return %c0_i32, %c0_i32_0 : i32, i32
  }
  func.func @transform_3(%arg0: i32) -> (i32, i32) {
    %c0_i32 = arith.constant 0 : i32
    %c0_i32_0 = arith.constant 0 : i32
    %c0_i32_1 = arith.constant 0 : i32
    return %c0_i32, %c0_i32_0 : i32, i32
  }
  func.func @transform_4(%arg0: i32) -> (i32, i32) {
    %c0_i32 = arith.constant 0 : i32
    %c0_i32_0 = arith.constant 0 : i32
    %c0_i32_1 = arith.constant 0 : i32
    return %c0_i32, %c0_i32_0 : i32, i32
  }
  func.func @transform_5(%arg0: i32) -> (i32, i32) {
    %c0_i32 = arith.constant 0 : i32
    %c0_i32_0 = arith.constant 0 : i32
    return %arg0, %c0_i32 : i32, i32
  }
}

</mosaic_0001>

<bundles_post_ra>
// kernel: tpu_custom_call.1
= control target key start
LH: loop header
LB: loop body
LE: loop exit
PB: predicated region body
PF: predicated region fallthrough
CT: control target
= control target key end

     0   :  { %10 = vsyncpa [#allocation3], 0  ;;  %s754_s0 = inlined_call_operand.hbm [shape: f32[128,128], index: 0, kind: input, shape index: {}]   ;;  %s755_s1 = inlined_call_operand.hbm [shape: bf16[128,128], index: 1, kind: input, shape index: {}]   ;;  %s756_s2 = inlined_call_operand.vmem [shape: f32[1,128], index: 2, kind: input, shape index: {}]   ;;  %s757_s3 = inlined_call_operand.hbm [shape: bf16[128,128], index: 3, kind: input, shape index: {}]   ;;  %s758_s4 = inlined_call_operand.vmem [shape: f32[1,128], index: 4, kind: input, shape index: {}]   ;;  %s759_s5 = inlined_call_operand.hbm [shape: f32[128,128], index: 5, kind: output, shape index: {}]  }
   0x1   :  { %11 = vsyncpa [#allocation6], 0  ;;  %s30_s20 = sshll.u32 %s755_s1, 4  ;;  %s31_s20 = int_to_ptr.hbm [resolvable:$true] %s30_s20 }
   0x2   :  { %12 = vsyncpa [#allocation4], 0  ;;  %s610_s21 = smov [#allocation5]   ;;  %s17_s25 = sshll.u32 %s754_s0, 4  ;;  %s18_s25 = int_to_ptr.hbm [resolvable:$true] %s17_s25 }
   0x3   :  { %s32_s22 = sshll.u32 %s610_s21, 4  ;;  %s611_s26 = smov 64   ;;  %s33_s22 = int_to_ptr.vmem [resolvable:$true] %s32_s22 }
   0x4   :  { %s612_s27 = smov 4   ;;  %s613_s28 = smov [#allocation2]  }
   0x5   :  { %38 = dma.hbm_to_vmem [thread:$0]  %s31_s20, 1024, %s33_s22, [#allocation6], %s611_s26, %s611_s26, %s612_s27  }
   0x6   :  { %s19_s29 = sshll.u32 %s613_s28, 4  ;;  %s614_s30 = smov 128   ;;  %s20_s29 = int_to_ptr.vmem [resolvable:$true] %s19_s29 }
   0x7   :  { %s615_s6 = smov 8   ;;  %s45_s8 = sshll.u32 %s757_s3, 4  ;;  %s46_s8 = int_to_ptr.hbm [resolvable:$true] %s45_s8 }
   0x8   :  { %25 = dma.hbm_to_vmem [thread:$0]  %s18_s25, 2048, %s20_s29, [#allocation3], %s614_s30, %s614_s30, %s615_s6  }
   0x9   :  { %s616_s9 = smov [#allocation7]  }
   0xa   :  { %s47_s0 = sshll.u32 %s616_s9, 4  ;;  %s48_s0 = int_to_ptr.vmem [resolvable:$true] %s47_s0 }
   0xb   :  { %53 = dma.hbm_to_vmem [thread:$0]  %s46_s8, 1024, %s48_s0, [#allocation6], %s611_s26, %s611_s26, %s612_s27  }
   0xc   :  { %604 = dma.done.wait [#allocation3], 2048  }
   0xd   :  { %605 = vsyncadd [#allocation3], 4294965248 }
   0xe   :  { %606 = dma.done.wait [#allocation6], 2048  }
   0xf   :  { %607 = vsyncadd [#allocation6], 4294965248  ;;  %v473_v0 = vld [vmem:[#allocation5 + $0x38] sm:$0xff]  ;;  %v472_v1 = vld [vmem:[#allocation5 + $0x30] sm:$0xff]  ;;  %s388_s15 = sshll.u32 %s759_s5, 4  ;;  %s389_s15 = int_to_ptr.hbm [resolvable:$true] %s388_s15 }
  0x10   :  { %160 = vmatpush.bf16.msra.mxu0 %v473_v0  ;;  %482 = vmatpush.bf16.msra.mxu2 %v473_v0  ;;  %v471_v2 = vld [vmem:[#allocation5 + $0x28] sm:$0xff]  ;;  %v470_v3 = vld [vmem:[#allocation5 + $0x20] sm:$0xff]  ;;  %v469_v4 = vld [vmem:[#allocation5 + $0x18] sm:$0xff] }
  0x11   :  { %v468_v5 = vld [vmem:[#allocation5 + $0x10] sm:$0xff]  ;;  %v467_v6 = vld [vmem:[#allocation5 + $0x8] sm:$0xff]  ;;  %v466_v7 = vld [vmem:[#allocation5] sm:$0xff] }
  0x12   :  { %v660_v8 = vld [vmem:[#allocation2] sm:$0xff]  ;;  %v662_v9 = vld [vmem:[#allocation2 + $0x8] sm:$0xff]  ;;  %v672_v14 = vld [vmem:[#allocation2 + $0x10] sm:$0xff] }
  0x13   :  { %v664_v10 = vld [vmem:[#allocation2 + $0x40] sm:$0xff]  ;;  %v666_v11 = vld [vmem:[#allocation2 + $0x48] sm:$0xff]  ;;  %v84_v12 = vpack.c.bf16 %v662_v9, %v660_v8  ;;  %v674_v15 = vld [vmem:[#allocation2 + $0x18] sm:$0xff] }
  0x14   :  { %161 = vmatpush.bf16.msra.mxu0 %v472_v1  ;;  %483 = vmatpush.bf16.msra.mxu2 %v472_v1  ;;  %v88_v13 = vpack.c.bf16 %v666_v11, %v664_v10  ;;  %v676_v16 = vld [vmem:[#allocation2 + $0x50] sm:$0xff]  ;;  %v678_v17 = vld [vmem:[#allocation2 + $0x58] sm:$0xff]  ;;  %v85_v18 = vpack.c.bf16 %v674_v15, %v672_v14  ;;  %v479_v22 = vld [vmem:[#allocation7 + $0x28] sm:$0xff] }
  0x15   :  { %v89_v19 = vpack.c.bf16 %v678_v17, %v676_v16  ;;  %v481_v20 = vld [vmem:[#allocation7 + $0x38] sm:$0xff]  ;;  %v480_v21 = vld [vmem:[#allocation7 + $0x30] sm:$0xff]  ;;  %v684_v23 = vld [vmem:[#allocation2 + $0x20] sm:$0xff] }
  0x16   :  { %301 = vmatpush.bf16.msra.mxu1 %v481_v20  ;;  %490 = vmatpush.bf16.msra.mxu3 %v481_v20  ;;  %v686_v24 = vld [vmem:[#allocation2 + $0x28] sm:$0xff]  ;;  %v688_v25 = vld [vmem:[#allocation2 + $0x60] sm:$0xff]  ;;  %v696_v30 = vld [vmem:[#allocation2 + $0x30] sm:$0xff] }
  0x17   :  { %v690_v26 = vld [vmem:[#allocation2 + $0x68] sm:$0xff]  ;;  %v478_v27 = vld [vmem:[#allocation7 + $0x20] sm:$0xff]  ;;  %v86_v28 = vpack.c.bf16 %v686_v24, %v684_v23  ;;  %v698_v31 = vld [vmem:[#allocation2 + $0x38] sm:$0xff] }
  0x18   :  { %162 = vmatpush.bf16.msra.mxu0 %v471_v2  ;;  %484 = vmatpush.bf16.msra.mxu2 %v471_v2  ;;  %v90_v29 = vpack.c.bf16 %v690_v26, %v688_v25  ;;  %v700_v32 = vld [vmem:[#allocation2 + $0x70] sm:$0xff]  ;;  %v702_v33 = vld [vmem:[#allocation2 + $0x78] sm:$0xff]  ;;  %v87_v34 = vpack.c.bf16 %v698_v31, %v696_v30  ;;  %v475_v38 = vld [vmem:[#allocation7 + $0x8] sm:$0xff] }
  0x19   :  { %v91_v35 = vpack.c.bf16 %v702_v33, %v700_v32  ;;  %v477_v36 = vld [vmem:[#allocation7 + $0x18] sm:$0xff]  ;;  %v476_v37 = vld [vmem:[#allocation7 + $0x10] sm:$0xff]  ;;  %v474_v39 = vld [vmem:[#allocation7] sm:$0xff] }
  0x1a   :  { %302 = vmatpush.bf16.msra.mxu1 %v480_v21  ;;  %491 = vmatpush.bf16.msra.mxu3 %v480_v21  ;;  %v506_v41 = vld [vmem:[%s756_s2] ss:$0 sm:$0xff] }
  0x1c   :  { %163 = vmatpush.bf16.msra.mxu0 %v470_v3  ;;  %485 = vmatpush.bf16.msra.mxu2 %v470_v3 }
  0x1e   :  { %303 = vmatpush.bf16.msra.mxu1 %v479_v22  ;;  %492 = vmatpush.bf16.msra.mxu3 %v479_v22 }
  0x20   :  { %164 = vmatpush.bf16.msra.mxu0 %v469_v4  ;;  %486 = vmatpush.bf16.msra.mxu2 %v469_v4 }
  0x22   :  { %304 = vmatpush.bf16.msra.mxu1 %v478_v27  ;;  %493 = vmatpush.bf16.msra.mxu3 %v478_v27 }
  0x24   :  { %165 = vmatpush.bf16.msra.mxu0 %v468_v5  ;;  %487 = vmatpush.bf16.msra.mxu2 %v468_v5 }
  0x26   :  { %305 = vmatpush.bf16.msra.mxu1 %v477_v36  ;;  %494 = vmatpush.bf16.msra.mxu3 %v477_v36 }
  0x28   :  { %166 = vmatpush.bf16.msra.mxu0 %v467_v6  ;;  %488 = vmatpush.bf16.msra.mxu2 %v467_v6 }
  0x2a   :  { %306 = vmatpush.bf16.msra.mxu1 %v476_v37  ;;  %495 = vmatpush.bf16.msra.mxu3 %v476_v37 }
  0x2c   :  { %167 = vmatpush.bf16.msra.mxu0 %v466_v7  ;;  %489 = vmatpush.bf16.msra.mxu2 %v466_v7 }
  0x2e   :  { %307 = vmatpush.bf16.msra.mxu1 %v475_v38  ;;  %496 = vmatpush.bf16.msra.mxu3 %v475_v38 }
  0x2f   :  { %168 = vmatmul.bf16.vlgmr.msra.gmra.mxu0 %v84_v12  ;;  %188 = vmatmul.bf16.vlgmr.msra.gmra.mxu2 %v88_v13 }
  0x32   :  { %308 = vmatpush.bf16.msra.mxu1 %v474_v39  ;;  %497 = vmatpush.bf16.msra.mxu3 %v474_v39 }
  0x3f   :  { %173 = vmatmul.bf16.gmra.mxu0 %v85_v18  ;;  %193 = vmatmul.bf16.gmra.mxu2 %v89_v19 }
  0x4f   :  { %178 = vmatmul.bf16.gmra.mxu0 %v86_v28  ;;  %198 = vmatmul.bf16.gmra.mxu2 %v90_v29 }
  0x5f   :  { %183 = vmatmul.bf16.gmra.mxu0 %v87_v34  ;;  %203 = vmatmul.bf16.gmra.mxu2 %v91_v35 }
  0xac   :  { %v169_v40 = vpop.f32.mrf.mxu0 }
  0xad   :  { %v170_v42 = vadd.f32 %v506_v41, %v169_v40 }
  0xaf   :  { %v209_v45 = vmax.f32 %v170_v42, 0.0 }
  0xb2   :  { %v189_v43 = vpop.f32.mrf.mxu2 }
  0xb3   :  { %v190_v48 = vadd.f32 %v506_v41, %v189_v43 }
  0xb4   :  { %v171_v44 = vpop.f32.mrf.mxu0 }
  0xb5   :  { %v172_v46 = vadd.f32 %v506_v41, %v171_v44  ;;  %v217_v53 = vmax.f32 %v190_v48, 0.0 }
  0xb7   :  { %v210_v47 = vmax.f32 %v172_v46, 0.0 }
  0xb9   :  { %v225_v49 = vpack.c.bf16 %v210_v47, %v209_v45 }
  0xba   :  { %v191_v50 = vpop.f32.mrf.mxu2 }
  0xbb   :  { %v192_v51 = vadd.f32 %v506_v41, %v191_v50  ;;  %309 = vmatmul.bf16.vlgmr.msra.gmra.mxu1 %v225_v49  ;;  %v714_v50 = vld [vmem:[%s758_s4] ss:$0 sm:$0xff]  ;;  %s617_s4 = smov [#allocation8]  }
  0xbc   :  { %v174_v52 = vpop.f32.mrf.mxu0  ;;  %s386_s12 = sshll.u32 %s617_s4, 4  ;;  %s387_s12 = int_to_ptr.vmem [resolvable:$true] %s386_s12 }
  0xbd   :  { %v218_v54 = vmax.f32 %v192_v51, 0.0  ;;  %v175_v56 = vadd.f32 %v506_v41, %v174_v52 }
  0xbf   :  { %v229_v55 = vpack.c.bf16 %v218_v54, %v217_v53  ;;  %v211_v59 = vmax.f32 %v175_v56, 0.0 }
  0xc1   :  { %329 = vmatmul.bf16.vlgmr.msra.gmra.mxu3 %v229_v55 }
  0xc2   :  { %v194_v57 = vpop.f32.mrf.mxu2 }
  0xc3   :  { %v195_v62 = vadd.f32 %v506_v41, %v194_v57 }
  0xc4   :  { %v176_v58 = vpop.f32.mrf.mxu0 }
  0xc5   :  { %v177_v60 = vadd.f32 %v506_v41, %v176_v58  ;;  %v219_v3 = vmax.f32 %v195_v62, 0.0 }
  0xc7   :  { %v212_v61 = vmax.f32 %v177_v60, 0.0 }
  0xc9   :  { %v226_v63 = vpack.c.bf16 %v212_v61, %v211_v59 }
  0xca   :  { %v196_v0 = vpop.f32.mrf.mxu2 }
  0xcb   :  { %v197_v1 = vadd.f32 %v506_v41, %v196_v0  ;;  %314 = vmatmul.bf16.gmra.mxu1 %v226_v63 }
  0xcc   :  { %v179_v2 = vpop.f32.mrf.mxu0 }
  0xcd   :  { %v220_v4 = vmax.f32 %v197_v1, 0.0  ;;  %v180_v6 = vadd.f32 %v506_v41, %v179_v2 }
  0xcf   :  { %v230_v5 = vpack.c.bf16 %v220_v4, %v219_v3  ;;  %v213_v13 = vmax.f32 %v180_v6, 0.0 }
  0xd1   :  { %334 = vmatmul.bf16.gmra.mxu3 %v230_v5 }
  0xd2   :  { %v199_v7 = vpop.f32.mrf.mxu2 }
  0xd3   :  { %v200_v20 = vadd.f32 %v506_v41, %v199_v7 }
  0xd4   :  { %v181_v12 = vpop.f32.mrf.mxu0 }
  0xd5   :  { %v182_v18 = vadd.f32 %v506_v41, %v181_v12  ;;  %v221_v29 = vmax.f32 %v200_v20, 0.0 }
  0xd7   :  { %v214_v19 = vmax.f32 %v182_v18, 0.0 }
  0xd9   :  { %v227_v21 = vpack.c.bf16 %v214_v19, %v213_v13 }
  0xda   :  { %v201_v22 = vpop.f32.mrf.mxu2 }
  0xdb   :  { %v202_v27 = vadd.f32 %v506_v41, %v201_v22  ;;  %319 = vmatmul.bf16.gmra.mxu1 %v227_v21 }
  0xdc   :  { %v184_v28 = vpop.f32.mrf.mxu0 }
  0xdd   :  { %v222_v34 = vmax.f32 %v202_v27, 0.0  ;;  %v185_v36 = vadd.f32 %v506_v41, %v184_v28 }
  0xdf   :  { %v231_v35 = vpack.c.bf16 %v222_v34, %v221_v29  ;;  %v215_v39 = vmax.f32 %v185_v36, 0.0 }
  0xe1   :  { %339 = vmatmul.bf16.gmra.mxu3 %v231_v35 }
  0xe2   :  { %v204_v37 = vpop.f32.mrf.mxu2 }
  0xe3   :  { %v205_v43 = vadd.f32 %v506_v41, %v204_v37 }
  0xe4   :  { %v186_v38 = vpop.f32.mrf.mxu0 }
  0xe5   :  { %v187_v40 = vadd.f32 %v506_v41, %v186_v38  ;;  %v223_v47 = vmax.f32 %v205_v43, 0.0 }
  0xe7   :  { %v216_v42 = vmax.f32 %v187_v40, 0.0 }
  0xe9   :  { %v228_v44 = vpack.c.bf16 %v216_v42, %v215_v39 }
  0xea   :  { %v206_v45 = vpop.f32.mrf.mxu2 }
  0xeb   :  { %v207_v46 = vadd.f32 %v506_v41, %v206_v45  ;;  %324 = vmatmul.bf16.gmra.mxu1 %v228_v44 }
  0xed   :  { %v224_v48 = vmax.f32 %v207_v46, 0.0 }
  0xef   :  { %v232_v49 = vpack.c.bf16 %v224_v48, %v223_v47 }
  0xf1   :  { %344 = vmatmul.bf16.gmra.mxu3 %v232_v49 }
 0x138   :  { %v310_v51 = vpop.f32.mrf.mxu1 }
 0x139   :  { %v311_v52 = vadd.f32 %v714_v50, %v310_v51 }
 0x13b   :  { %v350_v53 = vadd.f32 %v311_v52, %v660_v8 }
 0x13d   :  { %366 = vst [vmem:[#allocation8] sm:$0xff] %v350_v53 }
 0x140   :  { %v312_v54 = vpop.f32.mrf.mxu1 }
 0x141   :  { %v313_v55 = vadd.f32 %v714_v50, %v312_v54 }
 0x143   :  { %v351_v41 = vadd.f32 %v313_v55, %v662_v9 }
 0x144   :  { %v330_v56 = vpop.f32.mrf.mxu3 }
 0x145   :  { %367 = vst [vmem:[#allocation8 + $0x8] sm:$0xff] %v351_v41  ;;  %v331_v57 = vadd.f32 %v714_v50, %v330_v56 }
 0x147   :  { %v358_v58 = vadd.f32 %v331_v57, %v664_v10 }
 0x148   :  { %v315_v59 = vpop.f32.mrf.mxu1 }
 0x149   :  { %374 = vst [vmem:[#allocation8 + $0x40] sm:$0xff] %v358_v58  ;;  %v316_v60 = vadd.f32 %v714_v50, %v315_v59 }
 0x14b   :  { %v352_v61 = vadd.f32 %v316_v60, %v672_v14 }
 0x14c   :  { %v332_v62 = vpop.f32.mrf.mxu3 }
 0x14d   :  { %368 = vst [vmem:[#allocation8 + $0x10] sm:$0xff] %v352_v61  ;;  %v333_v8 = vadd.f32 %v714_v50, %v332_v62 }
 0x14f   :  { %v359_v63 = vadd.f32 %v333_v8, %v666_v11 }
 0x150   :  { %v317_v0 = vpop.f32.mrf.mxu1 }
 0x151   :  { %375 = vst [vmem:[#allocation8 + $0x48] sm:$0xff] %v359_v63  ;;  %v318_v9 = vadd.f32 %v714_v50, %v317_v0 }
 0x153   :  { %v353_v1 = vadd.f32 %v318_v9, %v674_v15 }
 0x154   :  { %v335_v2 = vpop.f32.mrf.mxu3 }
 0x155   :  { %369 = vst [vmem:[#allocation8 + $0x18] sm:$0xff] %v353_v1  ;;  %v336_v10 = vadd.f32 %v714_v50, %v335_v2 }
 0x157   :  { %v360_v3 = vadd.f32 %v336_v10, %v676_v16 }
 0x158   :  { %v320_v4 = vpop.f32.mrf.mxu1 }
 0x159   :  { %376 = vst [vmem:[#allocation8 + $0x50] sm:$0xff] %v360_v3  ;;  %v321_v14 = vadd.f32 %v714_v50, %v320_v4 }
 0x15b   :  { %v354_v5 = vadd.f32 %v321_v14, %v684_v23 }
 0x15c   :  { %v337_v6 = vpop.f32.mrf.mxu3 }
 0x15d   :  { %370 = vst [vmem:[#allocation8 + $0x20] sm:$0xff] %v354_v5  ;;  %v338_v11 = vadd.f32 %v714_v50, %v337_v6 }
 0x15f   :  { %v361_v7 = vadd.f32 %v338_v11, %v678_v17 }
 0x160   :  { %v322_v12 = vpop.f32.mrf.mxu1 }
 0x161   :  { %377 = vst [vmem:[#allocation8 + $0x58] sm:$0xff] %v361_v7  ;;  %v323_v15 = vadd.f32 %v714_v50, %v322_v12 }
 0x163   :  { %v355_v13 = vadd.f32 %v323_v15, %v686_v24 }
 0x164   :  { %v340_v18 = vpop.f32.mrf.mxu3 }
 0x165   :  { %371 = vst [vmem:[#allocation8 + $0x28] sm:$0xff] %v355_v13  ;;  %v341_v16 = vadd.f32 %v714_v50, %v340_v18 }
 0x167   :  { %v362_v19 = vadd.f32 %v341_v16, %v688_v25 }
 0x168   :  { %v325_v20 = vpop.f32.mrf.mxu1 }
 0x169   :  { %378 = vst [vmem:[#allocation8 + $0x60] sm:$0xff] %v362_v19  ;;  %v326_v23 = vadd.f32 %v714_v50, %v325_v20 }
 0x16b   :  { %v356_v21 = vadd.f32 %v326_v23, %v696_v30 }
 0x16c   :  { %v342_v22 = vpop.f32.mrf.mxu3 }
 0x16d   :  { %372 = vst [vmem:[#allocation8 + $0x30] sm:$0xff] %v356_v21  ;;  %v343_v17 = vadd.f32 %v714_v50, %v342_v22 }
 0x16f   :  { %v363_v27 = vadd.f32 %v343_v17, %v690_v26 }
 0x170   :  { %v327_v28 = vpop.f32.mrf.mxu1 }
 0x171   :  { %379 = vst [vmem:[#allocation8 + $0x68] sm:$0xff] %v363_v27  ;;  %v328_v24 = vadd.f32 %v714_v50, %v327_v28 }
 0x173   :  { %v357_v29 = vadd.f32 %v328_v24, %v698_v31 }
 0x174   :  { %v345_v34 = vpop.f32.mrf.mxu3 }
 0x175   :  { %373 = vst [vmem:[#allocation8 + $0x38] sm:$0xff] %v357_v29  ;;  %v346_v25 = vadd.f32 %v714_v50, %v345_v34 }
 0x177   :  { %v364_v35 = vadd.f32 %v346_v25, %v700_v32 }
 0x179   :  { %380 = vst [vmem:[#allocation8 + $0x70] sm:$0xff] %v364_v35 }
 0x17c   :  { %v347_v30 = vpop.f32.mrf.mxu3 }
 0x17d   :  { %v348_v26 = vadd.f32 %v714_v50, %v347_v30 }
 0x17f   :  { %v365_v36 = vadd.f32 %v348_v26, %v702_v33 }
 0x181   :  { %381 = vst [vmem:[#allocation8 + $0x78] sm:$0xff] %v365_v36 }
 0x182   :  { %394 = dma.vmem_to_hbm [thread:$0]  %s387_s12, 2048, %s389_s15, [#allocation4], %s614_s30, %s614_s30, %s615_s6  }
 0x183   :  { %608 = dma.done.wait [#allocation4], 2048  }
 0x184   :  { %609 = vsyncadd [#allocation4], 4294965248 }
 0x185   :  { %399 = vsyncpa [#allocation3], 1 }
 0x186   :  { %400 = vsyncpa [#allocation6], 1 }
 0x187   :  { %401 = vsyncpa [#allocation4], 1 }

</bundles_post_ra>
